<compile_context>
chip_gen: v7x
topology: tpu7x:2x2x1
jax: 0.10.0
libtpu: 0.0.40
codegen_flags: <defaults>
</compile_context>

<pallas_src>
import functools

import jax
import jax.numpy as jnp
from jax.experimental import pallas as pl
from jax.experimental.pallas import tpu as pltpu


def _round_up(x, m):
    return (x + m - 1) // m * m


def gcn_kernel(a_ref, xw1_ref, b1_ref, w2_ref, b2_ref, out_ref, acc_ref, *,
               out_dim, tk, xw1_resident):
    k = pl.program_id(1)

    @pl.when(k == 0)
    def _():
        acc_ref[...] = jnp.zeros_like(acc_ref)

    # Aggregate: A_hat[i-tile, k-tile] @ XW1[k-tile, :]  (bf16 in, f32 accum).
    if xw1_resident:
        # XW1 resident in VMEM for the whole grid; slice the current K window.
        kk = pl.multiple_of(k * tk, tk)
        xw1_blk = xw1_ref[pl.ds(kk, tk), :]
    else:
        xw1_blk = xw1_ref[...]
    acc_ref[...] += jnp.dot(a_ref[...], xw1_blk, preferred_element_type=jnp.float32)

    @pl.when(k == pl.num_programs(1) - 1)
    def _():
        # GCNConv bias + ReLU
        h = jnp.maximum(acc_ref[...] + b1_ref[...], 0.0)
        # F.dropout(x, training=self.training): eval mode -> identity
        # Linear on bf16 MXU inputs (f32 accumulation), f32 bias add.
        logits = (
            jnp.dot(h.astype(jnp.bfloat16), w2_ref[...],
                    preferred_element_type=jnp.float32)
            + b2_ref[...]
        )
        # Mask the lane padding out of the softmax normalizer, keep the
        # lane-dense (out_pad-wide) unmasked store.
        col = jax.lax.broadcasted_iota(jnp.int32, logits.shape, 1)
        logits = jnp.where(col < out_dim, logits, -jnp.inf)
        m = jnp.max(logits, axis=1, keepdims=True)
        z = logits - m
        lse = jnp.log(jnp.sum(jnp.exp(z), axis=1, keepdims=True))
        out_ref[...] = z - lse


def gcn_forward(a_hat, x, w1, b1, w2, b2, *, tm=512, tk=1024):
    n = x.shape[0]
    hidden = w1.shape[1]
    out_dim = w2.shape[1]

    # Hoist X @ W1 out of the tiled A_hat contraction (tiny [N,in]x[in,hid] GEMM).
    xw1 = jnp.dot(x, w1, preferred_element_type=jnp.float32)

    # Lane-dense padded feature dims.
    hidden_pad = _round_up(hidden, 128)
    out_pad = max(128, _round_up(out_dim, 128))

    # Tile sizes: clamp to the (padded) problem, keep vreg/MXU alignment.
    n16 = _round_up(n, 16)
    tm = _round_up(max(16, min(tm, n16)), 16)
    # Keep >= 2 row tiles when N allows it so v7x megacore can shard the
    # "parallel" row axis across both TensorCores (near-free on 1-TC chips).
    if n16 >= 256:
        tm = min(tm, _round_up((n16 + 1) // 2, 16))
    tk = _round_up(max(128, min(tk, _round_up(n, 128))), 128)

    n_rows = _round_up(n, tm)  # padded row count (multiple of tm)
    n_cols = _round_up(n, tk)  # padded col count (multiple of tk)
    grid = (n_rows // tm, n_cols // tk)

    # Per-generation VMEM budget (v7x: 64 MiB physical -> ~48 MiB limit;
    # v5e/v6e: 128 MiB -> ~100 MiB ceiling for a resident XW1 at larger N).
    try:
        vmem_cap = int(pltpu.get_tpu_info().vmem_capacity_bytes)
    except Exception:  # pragma: no cover - conservative fallback
        vmem_cap = 64 * 1024 * 1024
    vmem_limit = int(min((vmem_cap * 3) // 4, 100 * 1024 * 1024))

    # Decide whether the whole XW1 slab can stay VMEM-resident (DMA'd once).
    # Pallas double-buffers even constant-index blocks, hence the 2x factors.
    fixed_vmem = (
        2 * tm * tk * 2                   # A_hat tiles (bf16, double-buffered)
        + tm * hidden_pad * 4             # f32 accumulator scratch
        + 2 * tm * out_pad * 4            # output tiles (f32)
        + 2 * hidden_pad * out_pad * 2    # W2 (bf16)
        + 2 * (hidden_pad + out_pad) * 4  # biases
    )
    xw1_resident_bytes = 2 * n_cols * hidden_pad * 2
    xw1_resident = (fixed_vmem + xw1_resident_bytes) <= (vmem_limit * 3) // 4

    # Pad + cast the streamed operands directly in bf16 (no f32 padded copies);
    # zeros in the padding are exact no-ops for the math.
    a_p = jnp.zeros((n_rows, n_cols), jnp.bfloat16)
    a_p = a_p.at[:n, :n].set(a_hat.astype(jnp.bfloat16))
    xw1_p = jnp.zeros((n_cols, hidden_pad), jnp.bfloat16)
    xw1_p = xw1_p.at[:n, :hidden].set(xw1.astype(jnp.bfloat16))
    b1_p = jnp.zeros((1, hidden_pad), jnp.float32).at[:, :hidden].set(b1)
    w2_p = jnp.zeros((hidden_pad, out_pad), jnp.bfloat16)
    w2_p = w2_p.at[:hidden, :out_dim].set(w2.astype(jnp.bfloat16))
    b2_p = jnp.zeros((1, out_pad), jnp.float32).at[:, :out_dim].set(b2)

    if xw1_resident:
        xw1_spec = pl.BlockSpec((n_cols, hidden_pad), lambda i, k: (0, 0))
        xw1_hbm_bytes = n_cols * hidden_pad * 2                # fetched once
    else:
        xw1_spec = pl.BlockSpec((tk, hidden_pad), lambda i, k: (k, 0))
        xw1_hbm_bytes = grid[0] * n_cols * hidden_pad * 2      # per row tile

    cost = pl.CostEstimate(
        flops=2 * n_rows * n_cols * hidden_pad + 2 * n_rows * hidden_pad * out_pad,
        transcendentals=n_rows * out_pad,
        bytes_accessed=(
            n_rows * n_cols * 2          # A_hat stream (bf16)
            + xw1_hbm_bytes              # XW1
            + n_rows * out_pad * 4       # output (written once)
            + hidden_pad * out_pad * 2   # W2 (bf16)
        ),
    )

    out_padded = pl.pallas_call(
        functools.partial(
            gcn_kernel, out_dim=out_dim, tk=tk, xw1_resident=xw1_resident
        ),
        out_shape=jax.ShapeDtypeStruct((n_rows, out_pad), jnp.float32),
        grid=grid,
        in_specs=[
            pl.BlockSpec((tm, tk), lambda i, k: (i, k)),                # A_hat tile
            xw1_spec,                                                   # XW1
            pl.BlockSpec((1, hidden_pad), lambda i, k: (0, 0)),         # b1
            pl.BlockSpec((hidden_pad, out_pad), lambda i, k: (0, 0)),   # W2 (bf16)
            pl.BlockSpec((1, out_pad), lambda i, k: (0, 0)),            # b2
        ],
        out_specs=pl.BlockSpec((tm, out_pad), lambda i, k: (i, 0)),
        scratch_shapes=[pltpu.VMEM((tm, hidden_pad), jnp.float32)],
        compiler_params=pltpu.CompilerParams(
            dimension_semantics=("parallel", "arbitrary"),
            vmem_limit_bytes=vmem_limit,
        ),
        cost_estimate=cost,
    )(a_p, xw1_p, b1_p, w2_p, b2_p)

    return out_padded[:n, :out_dim]


def build_norm_adj(edge_index, num_nodes):
    """Dense D^-1/2 (A + I) D^-1/2 as used by GCNConv (symmetric normalization)."""
    A = jnp.zeros((num_nodes, num_nodes), jnp.float32)
    if edge_index.shape[1] > 0:
        src, dst = edge_index[0], edge_index[1]
        A = A.at[src, dst].set(1.0)
        A = A.at[dst, src].set(1.0)  # undirected edges
    A = A + jnp.eye(num_nodes, dtype=jnp.float32)  # add self-loops
    deg = jnp.sum(A, axis=1)
    d_inv_sqrt = 1.0 / jnp.sqrt(deg)
    return A * d_inv_sqrt[:, None] * d_inv_sqrt[None, :]


def reference_forward(a_hat, x, w1, b1, w2, b2):
    h = a_hat @ (x @ w1) + b1
    h = jnp.maximum(h, 0.0)
    logits = h @ w2 + b2
    return jax.nn.log_softmax(logits, axis=1)


if __name__ == "__main__":
    # Small synthetic problem: N nodes, input_dim -> hidden_dim -> output_dim.
    N, input_dim, hidden_dim, output_dim = 300, 16, 64, 8

    key = jax.random.PRNGKey(0)
    kx, kw1, kb1, kw2, kb2 = jax.random.split(key, 5)

    # Node features
    x = jax.random.normal(kx, (N, input_dim), dtype=jnp.float32)

    # Synthetic undirected edge list (the module's edge_list is empty; a ring
    # graph makes message passing non-trivial).
    src = jnp.arange(N, dtype=jnp.int32)
    dst = (src + 1) % N
    edge_index = jnp.stack([src, dst], axis=0)  # [2, E]

    a_hat = build_norm_adj(edge_index, N)

    # Deterministic parameter init (shapes follow GCNConv / nn.Linear)
    w1 = jax.random.normal(kw1, (input_dim, hidden_dim), dtype=jnp.float32) * 0.1
    b1 = jax.random.normal(kb1, (1, hidden_dim), dtype=jnp.float32) * 0.01
    w2 = jax.random.normal(kw2, (hidden_dim, output_dim), dtype=jnp.float32) * 0.1
    b2 = jax.random.normal(kb2, (1, output_dim), dtype=jnp.float32) * 0.01

    ref = reference_forward(a_hat, x, w1, b1, w2, b2)

    # Run 1: default (large) tiles -> clamped to N, resident XW1, single K step.
    out = gcn_forward(a_hat, x, w1, b1, w2, b2)
    out = jax.block_until_ready(out)
    assert out.shape == (N, output_dim)
    # bf16 A_hat / XW1 / W2 streams (f32 accumulation) -> looser tolerance vs f32.
    assert jnp.allclose(out, ref, atol=2.5e-2, rtol=2.5e-2), "mismatch (default tiles)"

    # Run 2: small tiles -> multi-tile K accumulation + resident-slab K slicing.
    out2 = gcn_forward(a_hat, x, w1, b1, w2, b2, tm=128, tk=128)
    out2 = jax.block_until_ready(out2)
    assert out2.shape == (N, output_dim)
    assert jnp.allclose(out2, ref, atol=2.5e-2, rtol=2.5e-2), "mismatch (small tiles)"

    print("KERNEL_OK")
</pallas_src>

<mosaic_0001>
module attributes {stable_mosaic.version = 11 : i64} {
  func.func @gcn_kernel(%arg0: i32, %arg1: i32, %arg2: memref<160x384xbf16, #tpu.memory_space<vmem>>, %arg3: memref<384x128xbf16, #tpu.memory_space<vmem>>, %arg4: memref<1x128xf32, #tpu.memory_space<vmem>>, %arg5: memref<128x128xbf16, #tpu.memory_space<vmem>>, %arg6: memref<1x128xf32, #tpu.memory_space<vmem>>, %arg7: memref<160x128xf32, #tpu.memory_space<vmem>>, %arg8: memref<160x128xf32, #tpu.memory_space<vmem>>) attributes {dimension_semantics = [#tpu.dimension_semantics<parallel>, #tpu.dimension_semantics<arbitrary>], iteration_bounds = array<i64: 2, 1>, scalar_prefetch = 0 : i64, scratch_operands = 1 : i64, tpu.core_type = #tpu.core_type<tc>, window_params = [{transform_indices = @transform_0, window_bounds = array<i64: 160, 384>}, {pipeline_mode = #tpu.pipeline_mode<synchronous>, transform_indices = @transform_1, window_bounds = array<i64: 384, 128>}, {pipeline_mode = #tpu.pipeline_mode<synchronous>, transform_indices = @transform_2, window_bounds = array<i64: 1, 128>}, {pipeline_mode = #tpu.pipeline_mode<synchronous>, transform_indices = @transform_3, window_bounds = array<i64: 128, 128>}, {pipeline_mode = #tpu.pipeline_mode<synchronous>, transform_indices = @transform_4, window_bounds = array<i64: 1, 128>}, {transform_indices = @transform_5, window_bounds = array<i64: 160, 128>}]} {
    %c0_i32 = arith.constant 0 : i32
    %0 = arith.cmpi eq, %arg1, %c0_i32 : i32
    %1 = arith.extui %0 : i1 to i32
    %c0_i32_0 = arith.constant 0 : i32
    %2 = arith.cmpi ne, %1, %c0_i32_0 : i32
    scf.if %2 {
      %cst_9 = arith.constant 0.000000e+00 : f32
      %15 = vector.broadcast %cst_9 : f32 to vector<160x128xf32>
      %c0_10 = arith.constant 0 : index
      %c0_11 = arith.constant 0 : index
      %16 = vector.load %arg8[%c0_10, %c0_11] : memref<160x128xf32, #tpu.memory_space<vmem>>, vector<160x128xf32>
      tpu.vector_store %arg8[%c0_10, %c0_11], %15 {strides = array<i32>} : memref<160x128xf32, #tpu.memory_space<vmem>>, vector<160x128xf32>,
    } else {
    }
    %c384_i32 = arith.constant 384 : i32
    %3 = arith.muli %arg1, %c384_i32 : i32
    %4 = tpu.assume_multiple %3, 384 : i32
    %5 = arith.index_cast %4 : i32 to index
    %c0 = arith.constant 0 : index
    %6 = vector.load %arg3[%5, %c0] : memref<384x128xbf16, #tpu.memory_space<vmem>>, vector<384x128xbf16>
    %c0_1 = arith.constant 0 : index
    %c0_2 = arith.constant 0 : index
    %7 = vector.load %arg8[%c0_1, %c0_2] : memref<160x128xf32, #tpu.memory_space<vmem>>, vector<160x128xf32>
    %c0_3 = arith.constant 0 : index
    %c0_4 = arith.constant 0 : index
    %8 = vector.load %arg2[%c0_3, %c0_4] : memref<160x384xbf16, #tpu.memory_space<vmem>>, vector<160x384xbf16>
    %cst = arith.constant dense<0.000000e+00> : vector<160x128xf32>
    %9 = tpu.matmul %8, %6, %cst {dimension_numbers = #tpu.dot_dimension_numbers<[1], [0], [0], [1], [0, 0, 1, 1], [], []>} : vector<160x384xbf16>, vector<384x128xbf16>, vector<160x128xf32> -> vector<160x128xf32>
    %10 = arith.addf %7, %9 : vector<160x128xf32>
    %c0_5 = arith.constant 0 : index
    %c0_6 = arith.constant 0 : index
    %11 = vector.load %arg8[%c0_5, %c0_6] : memref<160x128xf32, #tpu.memory_space<vmem>>, vector<160x128xf32>
    tpu.vector_store %arg8[%c0_5, %c0_6], %10 {strides = array<i32>} : memref<160x128xf32, #tpu.memory_space<vmem>>, vector<160x128xf32>,
    %c0_i32_7 = arith.constant 0 : i32
    %12 = arith.cmpi eq, %arg1, %c0_i32_7 : i32
    %13 = arith.extui %12 : i1 to i32
    %c0_i32_8 = arith.constant 0 : i32
    %14 = arith.cmpi ne, %13, %c0_i32_8 : i32
    scf.if %14 {
      %c0_9 = arith.constant 0 : index
      %c0_10 = arith.constant 0 : index
      %15 = vector.load %arg8[%c0_9, %c0_10] : memref<160x128xf32, #tpu.memory_space<vmem>>, vector<160x128xf32>
      %c0_11 = arith.constant 0 : index
      %c0_12 = arith.constant 0 : index
      %16 = vector.load %arg4[%c0_11, %c0_12] : memref<1x128xf32, #tpu.memory_space<vmem>>, vector<1x128xf32>
      %17 = vector.broadcast %16 : vector<1x128xf32> to vector<160x128xf32>
      %18 = arith.addf %15, %17 : vector<160x128xf32>
      %cst_13 = arith.constant 0.000000e+00 : f32
      %19 = vector.broadcast %cst_13 : f32 to vector<160x128xf32>
      %20 = arith.maximumf %18, %19 : vector<160x128xf32>
      %21 = arith.truncf %20 : vector<160x128xf32> to vector<160x128xbf16>
      %c0_14 = arith.constant 0 : index
      %c0_15 = arith.constant 0 : index
      %22 = vector.load %arg5[%c0_14, %c0_15] : memref<128x128xbf16, #tpu.memory_space<vmem>>, vector<128x128xbf16>
      %cst_16 = arith.constant dense<0.000000e+00> : vector<160x128xf32>
      %23 = tpu.matmul %21, %22, %cst_16 {dimension_numbers = #tpu.dot_dimension_numbers<[1], [0], [0], [1], [0, 0, 1, 1], [], []>} : vector<160x128xbf16>, vector<128x128xbf16>, vector<160x128xf32> -> vector<160x128xf32>
      %c0_17 = arith.constant 0 : index
      %c0_18 = arith.constant 0 : index
      %24 = vector.load %arg6[%c0_17, %c0_18] : memref<1x128xf32, #tpu.memory_space<vmem>>, vector<1x128xf32>
      %25 = vector.broadcast %24 : vector<1x128xf32> to vector<160x128xf32>
      %26 = arith.addf %23, %25 : vector<160x128xf32>
      %27 = tpu.iota {dimensions = array<i32: 1>} : vector<160x128xi32>
      %c8_i32 = arith.constant 8 : i32
      %28 = vector.broadcast %c8_i32 : i32 to vector<160x128xi32>
      %29 = arith.cmpi slt, %27, %28 : vector<160x128xi32>
      %cst_19 = arith.constant 0xFF800000 : f32
      %30 = vector.broadcast %cst_19 : f32 to vector<160x128xf32>
      %31 = arith.select %29, %26, %30 : vector<160x128xi1>, vector<160x128xf32>
      %cst_20 = arith.constant dense<0xFF800000> : vector<160xf32>
      %32 = vector.multi_reduction <maximumf>, %31, %cst_20 [1] : vector<160x128xf32> to vector<160xf32>
      %33 = vector.shape_cast %32 : vector<160xf32> to vector<160x1xf32>
      %34 = vector.broadcast %33 : vector<160x1xf32> to vector<160x128xf32>
      %35 = arith.subf %31, %34 : vector<160x128xf32>
      %36 = math.exp %35 : vector<160x128xf32>
      %cst_21 = arith.constant dense<0.000000e+00> : vector<160xf32>
      %37 = vector.multi_reduction <add>, %36, %cst_21 [1] : vector<160x128xf32> to vector<160xf32>
      %38 = vector.shape_cast %37 : vector<160xf32> to vector<160x1xf32>
      %39 = math.log %38 : vector<160x1xf32>
      %40 = vector.broadcast %39 : vector<160x1xf32> to vector<160x128xf32>
      %41 = arith.subf %35, %40 : vector<160x128xf32>
      %c0_22 = arith.constant 0 : index
      %c0_23 = arith.constant 0 : index
      %42 = vector.load %arg7[%c0_22, %c0_23] : memref<160x128xf32, #tpu.memory_space<vmem>>, vector<160x128xf32>
      tpu.vector_store %arg7[%c0_22, %c0_23], %41 {strides = array<i32>} : memref<160x128xf32, #tpu.memory_space<vmem>>, vector<160x128xf32>,
    } else {
    }
    return
  }
  func.func @transform_0(%arg0: i32, %arg1: i32) -> (i32, i32) {
    %c0_i32 = arith.constant 0 : i32
    return %arg0, %arg1 : i32, i32
  }
  func.func @transform_1(%arg0: i32, %arg1: i32) -> (i32, i32) {
    %c0_i32 = arith.constant 0 : i32
    %c0_i32_0 = arith.constant 0 : i32
    %c0_i32_1 = arith.constant 0 : i32
    return %c0_i32, %c0_i32_0 : i32, i32
  }
  func.func @transform_2(%arg0: i32, %arg1: i32) -> (i32, i32) {
    %c0_i32 = arith.constant 0 : i32
    %c0_i32_0 = arith.constant 0 : i32
    %c0_i32_1 = arith.constant 0 : i32
    return %c0_i32, %c0_i32_0 : i32, i32
  }
  func.func @transform_3(%arg0: i32, %arg1: i32) -> (i32, i32) {
    %c0_i32 = arith.constant 0 : i32
    %c0_i32_0 = arith.constant 0 : i32
    %c0_i32_1 = arith.constant 0 : i32
    return %c0_i32, %c0_i32_0 : i32, i32
  }
  func.func @transform_4(%arg0: i32, %arg1: i32) -> (i32, i32) {
    %c0_i32 = arith.constant 0 : i32
    %c0_i32_0 = arith.constant 0 : i32
    %c0_i32_1 = arith.constant 0 : i32
    return %c0_i32, %c0_i32_0 : i32, i32
  }
  func.func @transform_5(%arg0: i32, %arg1: i32) -> (i32, i32) {
    %c0_i32 = arith.constant 0 : i32
    %c0_i32_0 = arith.constant 0 : i32
    return %arg0, %c0_i32 : i32, i32
  }
}

</mosaic_0001>

<bundles_post_ra>
// kernel: tpu_custom_call.1
= control target key start
LH: loop header
LB: loop body
LE: loop exit
PB: predicated region body
PF: predicated region fallthrough
CT: control target
= control target key end

     0   :  { %10 = vsyncpa [#allocation4], 0  ;;  %s2922_s0 = inlined_call_operand.hbm [shape: bf16[320,384], index: 0, kind: input, shape index: {}]   ;;  %s2923_s1 = inlined_call_operand.hbm [shape: bf16[384,128], index: 1, kind: input, shape index: {}]   ;;  %s2924_s2 = inlined_call_operand.vmem [shape: f32[1,128], index: 2, kind: input, shape index: {}]   ;;  %s2925_s3 = inlined_call_operand.hbm [shape: bf16[128,128], index: 3, kind: input, shape index: {}]   ;;  %s2926_s4 = inlined_call_operand.vmem [shape: f32[1,128], index: 4, kind: input, shape index: {}]   ;;  %s2927_s5 = inlined_call_operand.hbm [shape: f32[320,128], index: 5, kind: output, shape index: {}]  }
   0x1   :  { %12 = vsyncpa [#allocation4 + $0x1], 0 }
   0x2   :  { %13 = vsyncpa [#allocation7], 0 }
   0x3   :  { %14 = vsyncpa [#allocation5], 0 }
   0x4   :  { %16 = vsyncpa [#allocation5 + $0x1], 0  ;;  %s2348_s18 = smov 0   ;;  %s2350_s19 = smov 0  }
   0x5   :  { %s2352_s20 = smov 0   ;;  %s2354_s21 = smov 0  }
   0x6   :  { %s2356_s22 = smov 0   ;;  %s2358_s23 = smov 0  }
   0x7 LB: > { %s1626_s24 = sadd.s32 4294967295, %s2306_s23   ;;  %s1627_s25 = sadd.s32 4294967294, %s2306_s23   ;;  %s2306_s23 = sphi %s2358_s23, %s22_s23   ;;  %s2302_s22 = sphi %s2356_s22, %s2949_s22   ;;  %s2298_s21 = sphi %s2354_s21, %s2948_s21   ;;  %s2294_s20 = sphi %s2352_s20, %s2947_s20   ;;  %s2290_s19 = sphi %s2350_s19, %s2946_s19   ;;  %s2286_s18 = sphi %s2348_s18, %s2945_s18  }
   0x8   : > { %p56_p0 = scmp.ne.s32.totalorder %s2290_s19, %s2286_s18  ;;  %p2382_p1 = scmp.eq.s32.totalorder %s1626_s24, 0 }
   0x9   : > { %p2386_p2 = scmp.eq.s32.totalorder %s1626_s24, 1  ;;  %p170_p3 = scmp.eq.s32.totalorder %s1627_s25, 1 }
   0xa   : > { %s2932_s26 = scalar_select %p2382_p1, 1, 0 }
   0xb   : > { %p2392_p4 = por %p2382_p1, %p56_p0  ;;  %p1628_p5 = scmp.ge.s32.totalorder %s2306_s23, 1 }
   0xc   : > { %p2397_p6 = por %p170_p3, %p56_p0  ;;  %p177_p7 = scmp.lt.s32.totalorder %s2306_s23, 3 }
   0xd   : > { %s2934_s28 = scalar_select %p2392_p4, 1, 0 }
   0xe   : > { %s2935_s29 = scalar_select %p2397_p6, 1, 0 }
   0xf   : > { %p2402_p8 = pnand %p1628_p5, %p177_p7  ;;  %s2308_s6 = smov [#allocation6]  }
  0x10   : > { %s189_s7 = sshll.u32 %s2308_s6, 4  ;;  %s2309_s9 = smov [#allocation8]   ;;  %s2406_s7 = int_to_ptr.vmem [resolvable:$true] %s189_s7 }
  0x11   : > { %p1904_p9 = pneg %p2402_p8  ;;  %s205_s10 = sshll.u32 %s2309_s9, 4  ;;  %s2417_s10 = int_to_ptr.vmem [resolvable:$true] %s205_s10 }
  0x12   : > { %s2134_s13 = scalar_lea.hbm %s2923_s1, 3072 }
  0x13   : > { %p2413_p11 = pnand %p1904_p9, %p2382_p1  ;;  %p2135_p12 = scmp.ne.s32.totalorder %s2923_s1, %s2134_s13 }
  0x14   : > { %p2141_p5 = scmp.lt.u32.totalorder %s2134_s13, %s2923_s1 }
  0x15   : > { %p2136_p13 = pneg %p2413_p11 }
  0x17   : > { %p2137_p0 = pnand %p2136_p13, %p2135_p12 }
  0x19   : > { %p2138_p3 = pneg %p2137_p0 }
  0x1b   : > { %p2143_p7 = pnand %p2141_p5, %p2138_p3 }
  0x1d   : > { %2146 = shalt.err (!%p2143_p7)
}
  0x1e   : > { %s2147_s24 = scalar_lea.vmem %s2406_s7, 3072  ;;  %p2155_p1 = scmp.lt.s32.totalorder %s2406_s7, %s2406_s7 }
  0x1f   : > { %p2148_p9 = scmp.ne.s32.totalorder %s2406_s7, %s2147_s24  ;;  %p2156_p12 = scmp.lt.s32.totalorder %s2147_s24, %s2147_s24 }
  0x21   : > { %p2150_p10 = pnand %p2148_p9, %p2136_p13  ;;  %p2157_p0 = por %p2156_p12, %p2155_p1 }
  0x23   : > { %p2151_p6 = pneg %p2150_p10 }
  0x25   : > { %p2158_p4 = pnand %p2157_p0, %p2151_p6 }
  0x27   : > { %2161 = shalt.err (!%p2158_p4)
}
  0x28   : > { %s2310_s25 = smov 64   ;;  %s2311_s6 = smov 4  }
  0x29   : > { %1907 = dma.hbm_to_vmem [thread:$0]  (!%p2413_p11), %s2923_s1, 3072, %s2406_s7, [#allocation7], %s2310_s25, %s2310_s25, %s2311_s6  }
  0x2a   : > { %s2162_s14 = scalar_lea.hbm %s2925_s3, 1024 }
  0x2b   : > { %p2163_p1 = scmp.ne.s32.totalorder %s2925_s3, %s2162_s14  ;;  %p2169_p10 = scmp.lt.u32.totalorder %s2162_s14, %s2925_s3 }
  0x2d   : > { %p2165_p4 = pnand %p2163_p1, %p2136_p13 }
  0x2f   : > { %p2166_p6 = pneg %p2165_p4 }
  0x31   : > { %p2171_p3 = pnand %p2169_p10, %p2166_p6 }
  0x33   : > { %2174 = shalt.err (!%p2171_p3)
}
  0x34   : > { %s2175_s7 = scalar_lea.vmem %s2417_s10, 1024  ;;  %p2183_p12 = scmp.lt.s32.totalorder %s2417_s10, %s2417_s10 }
  0x35   : > { %p2176_p5 = scmp.ne.s32.totalorder %s2417_s10, %s2175_s7  ;;  %p2184_p0 = scmp.lt.s32.totalorder %s2175_s7, %s2175_s7 }
  0x37   : > { %p2178_p7 = pnand %p2176_p5, %p2136_p13  ;;  %p2185_p1 = por %p2184_p0, %p2183_p12 }
  0x39   : > { %p2179_p9 = pneg %p2178_p7 }
  0x3b   : > { %p2186_p4 = pnand %p2185_p1, %p2179_p9 }
  0x3d   : > { %2189 = shalt.err (!%p2186_p4)
}
  0x3e   : > { %1910 = dma.hbm_to_vmem [thread:$0]  (!%p2413_p11), %s2925_s3, 1024, %s2417_s10, [#allocation7], %s2310_s25, %s2310_s25, %s2311_s6  }
  0x3f   : > { %s34_s12 = sadd.s32 1, %s2302_s22  ;;  %s43_s13 = sadd.s32 1, %s2294_s20 }
  0x40   : > { %p36_p13 = scmp.ge.s32.totalorder %s34_s12, 2  ;;  %p50_p6 = scmp.ne.s32.totalorder %s2294_s20, %s2290_s19 }
  0x41   : > { %p51_p10 = scmp.eq.s32.totalorder %s2306_s23, 0  ;;  %p1921_p3 = scmp.lt.s32.totalorder %s2306_s23, 2 }
  0x42   : > { %s2951_s12 = smov (%p36_p13, %s34_s12), 0  ;;  %p2481_p7 = por %p2386_p2, %p50_p6 }
  0x43   : > { %p52_p5 = por %p51_p10, %p50_p6  ;;  %s38_s14 = ssub.s32 %s2302_s22, %s2951_s12 }
  0x44   : > { %s2938_s8 = scalar_select %p2481_p7, 1, 0 }
  0x45   : > { %s222_s15 = sand.u32 1, %s2294_s20   ;;  %p41_p9 = scmp.eq.s32.totalorder %s38_s14, 0 }
  0x46   : > { %s1888_s10 = smul.u32 240, %s222_s15  ;;  %p2488_p11 = pnand %p1921_p3, %p52_p5 }
  0x47   : > { %s2493_s6 = scalar_select %p41_p9, %s2294_s20, %s43_s13  }
  0x48   : > { %s1922_s16 = smul.u32 3840, %s2302_s22  ;;  %s226_s17 = scalar_lea.vmem [#allocation3], %s1888_s10 }
  0x49   : > { %s236_s24 = sshll.u32 %s226_s17, 4  ;;  %s2503_s11 = scalar_lea.sflag [#allocation4], %s222_s15  ;;  %s2496_s24 = int_to_ptr.vmem [resolvable:$true] %s236_s24 }
  0x4a   : > { %s2501_s9 = scalar_lea.hbm %s2922_s0, %s1922_s16  ;;  %p2192_p12 = pneg %p2488_p11 }
  0x4b   : > { %s2190_s14 = scalar_lea.hbm %s2501_s9, 3840  ;;  %s2195_s17 = scalar_lea.hbm %s2922_s0, 7680 }
  0x4c   : > { %p2191_p2 = scmp.ne.s32.totalorder %s2501_s9, %s2190_s14  ;;  %p2196_p4 = scmp.lt.u32.totalorder %s2501_s9, %s2922_s0 }
  0x4d   : > { %p2197_p13 = scmp.lt.u32.totalorder %s2195_s17, %s2190_s14  ;;  %p2199_p10 = scmp.lt.u32.totalorder %s2190_s14, %s2501_s9 }
  0x4e   : > { %p2193_p0 = pnand %p2192_p12, %p2191_p2 }
  0x4f   : > { %p2198_p6 = por %p2197_p13, %p2196_p4 }
  0x50   : > { %p2194_p1 = pneg %p2193_p0 }
  0x51   : > { %p2200_p3 = por %p2199_p10, %p2198_p6 }
  0x53   : > { %p2201_p5 = pnand %p2200_p3, %p2194_p1 }
  0x55   : > { %2204 = shalt.err (!%p2201_p5)
}
  0x56   : > { %s2205_s15 = scalar_lea.vmem %s2496_s24, 3840  ;;  %s2312_s7 = smov [#allocation3]  }
  0x57   : > { %p2206_p9 = scmp.ne.s32.totalorder %s2496_s24, %s2205_s15  ;;  %s2210_s13 = sshll.u32 %s2312_s7, 4  ;;  %s2211_s13 = int_to_ptr.vmem [resolvable:$false] %s2210_s13 }
  0x58   : > { %s2212_s10 = scalar_lea.vmem %s2211_s13, 7680  ;;  %p2213_p7 = scmp.lt.s32.totalorder %s2496_s24, %s2211_s13 }
  0x59   : > { %p2208_p2 = pnand %p2206_p9, %p2192_p12  ;;  %p2214_p4 = scmp.lt.s32.totalorder %s2212_s10, %s2205_s15 }
  0x5b   : > { %p2209_p0 = pneg %p2208_p2  ;;  %p2215_p13 = por %p2214_p4, %p2213_p7 }
  0x5d   : > { %p2216_p6 = pnand %p2215_p13, %p2209_p0 }
  0x5f   : > { %2219 = shalt.err (!%p2216_p6)
}
  0x60   : > { %s2313_s14 = smov 192   ;;  %s2314_s17 = smov 12  }
  0x61   : > { %1914 = dma.hbm_to_vmem [thread:$0]  (!%p2488_p11), %s2501_s9, 3840, %s2496_s24, %s2503_s11, %s2313_s14, %s2313_s14, %s2314_s17  }
  0x62   : > { %248 = sbr.rel (%p2402_p8) target bundleno = 990 (0x3de), region = 40  ;;  %s2534_s16 = sand.u32 (!%p2402_p8), 1, %s2290_s19  }
  0x63   : > { %s1890_s27 = smul.u32 (!%p2402_p8), 240, %s2534_s16  ;;  %s251_s15 = scalar_lea.sflag (!%p2402_p8), [#allocation4], %s2534_s16 }
  0x64   : > { %p2940_p7 = scmp.ne.s32.totalorder (!%p2402_p8), %s2934_s28, 0 }
  0x65   : > { %s2538_s7 = scalar_lea.vmem (!%p2402_p8), [#allocation3], %s1890_s27 }
  0x69   : > { %2273 = dma.done.wait (%p2940_p7), %s251_s15, 3840  }
  0x6a   : > { %2275 = vsyncadd (%p2940_p7), %s251_s15, 4294963456  ;;  %p2941_p11 = scmp.ne.s32.totalorder %s2932_s26, 0 }
  0x6c   : > { %2277 = dma.done.wait (%p2941_p11), [#allocation7], 4096  }
  0x6d   : > { %2279 = vsyncadd (%p2941_p11), [#allocation7], 4294963200  ;;  %v1982_v0 = vld [vmem:[#allocation6 + $0x40] sm:$0xff]   ;;  %v1985_v3 = vld [vmem:[#allocation6 + $0x48] sm:$0xff]   ;;  %s1891_s24 = smul.u32 160, %s2534_s16  ;;  %p2942_p12 = scmp.ne.s32.totalorder %s2938_s8, 0 }
  0x6e   : > { %v1983_v1 = vld [vmem:[#allocation6] sm:$0xff]   ;;  %1704 = vmatprep.subr.bf16.mxu0 %v1982_v0  ;;  %v1986_v4 = vld [vmem:[#allocation6 + $0x8] sm:$0xff]   ;;  %v1988_v6 = vld [vmem:[#allocation6 + $0x50] sm:$0xff]   ;;  %s1703_s11 = smul.u32 2560, %s2298_s21  ;;  %s1508_s21 = scalar_lea.sflag [#allocation5], %s2534_s16 }
  0x6f   : > { %v1984_v2 = vld [vmem:[#allocation6 + $0x80] sm:$0xff]   ;;  %1705 = vmatpush3.bf16.msra.mxu0 %v1983_v1  ;;  %v1987_v5 = vld [vmem:[#allocation6 + $0x88] sm:$0xff]   ;;  %v1989_v7 = vld [vmem:[#allocation6 + $0x10] sm:$0xff]   ;;  %s2825_s9 = scalar_lea.vmem [#allocation9], %s1891_s24  ;;  %s2315_s15 = smov [#allocation9]  }
  0x70   : > { %1816 = vmatprep.subr.bf16.mxu1 %v1984_v2  ;;  %1706 = vmatprep.subr.bf16.mxu0 %v1985_v3  ;;  %v1990_v8 = vld [vmem:[#allocation6 + $0x90] sm:$0xff]   ;;  %v1991_v9 = vld [vmem:[#allocation6 + $0x58] sm:$0xff]   ;;  %v1994_v12 = vld [vmem:[#allocation6 + $0x60] sm:$0xff]   ;;  %s1521_s13 = sshll.u32 %s2825_s9, 4  ;;  %s2868_s17 = scalar_lea.hbm %s2927_s5, %s1703_s11  ;;  %s2870_s13 = int_to_ptr.vmem [resolvable:$true] %s1521_s13 }
  0x71   : > { %1817 = vmatpush3.bf16.msra.mxu1 %v1984_v2  ;;  %v1992_v10 = vld [vmem:[#allocation6 + $0x18] sm:$0xff]   ;;  %v1996_v13 = vld [vmem:[#allocation6 + $0xa0] sm:$0xff]   ;;  %v1997_v15 = vld [vmem:[#allocation6 + $0x68] sm:$0xff]   ;;  %s2220_s27 = scalar_lea.vmem %s2870_s13, 2560 }
  0x72   : > { %1818 = vmatprep.subr.bf16.mxu1 %v1987_v5  ;;  %v1993_v11 = vld [vmem:[#allocation6 + $0x98] sm:$0xff]   ;;  %v1995_v14 = vld [vmem:[#allocation6 + $0x20] sm:$0xff]   ;;  %v1999_v16 = vld [vmem:[#allocation6 + $0xa8] sm:$0xff]   ;;  %p2221_p8 = scmp.ne.s32.totalorder %s2870_s13, %s2220_s27 }
  0x73   : > { %1707 = vmatpush3.bf16.msra.mxu0 %v1986_v4  ;;  %v1998_v17 = vld [vmem:[#allocation6 + $0x28] sm:$0xff]   ;;  %v2000_v18 = vld [vmem:[#allocation6 + $0x70] sm:$0xff]   ;;  %v2003_v21 = vld [vmem:[#allocation6 + $0x78] sm:$0xff]  }
  0x74   : > { %1708 = vmatprep.subr.bf16.mxu0 %v1988_v6  ;;  %v2001_v19 = vld [vmem:[#allocation6 + $0x30] sm:$0xff]   ;;  %v2005_v22 = vld [vmem:[#allocation6 + $0xb8] sm:$0xff]   ;;  %v2046_v38 = vld [vmem:[#allocation8] sm:$0xff]   ;;  %p2222_p1 = pnand %p2221_p8, %p2942_p12 }
  0x75   : > { %1819 = vmatpush3.bf16.msra.mxu1 %v1987_v5  ;;  %v2002_v20 = vld [vmem:[#allocation6 + $0xb0] sm:$0xff]   ;;  %v2004_v25 = vld [vmem:[#allocation6 + $0x38] sm:$0xff]   ;;  %v2047_v39 = vld [vmem:[#allocation8 + $0x8] sm:$0xff]  }
  0x76   : > { %1820 = vmatprep.subr.bf16.mxu1 %v1990_v8  ;;  %v2008_v23 = vld [vmem:[%s2538_s7 + $0x4] ss:$12 sps:$4 sm:$0xff]   ;;  %v2009_v24 = vld [vmem:[%s2538_s7 + $0x8] ss:$12 sps:$4 sm:$0xff]   ;;  %v2006_v26 = vld [vmem:[%s2538_s7] ss:$12 sps:$4 sm:$0xff]   ;;  %p2223_p10 = pneg %p2222_p1 }
  0x77   : > { %1709 = vmatpush3.bf16.msra.mxu0 %v1989_v7  ;;  %766 = vmatprep.mubr.bf16.mxu0 %v2008_v23  ;;  %v2011_v27 = vld [vmem:[%s2538_s7 + $0x1c] ss:$12 sps:$4 sm:$0xff]   ;;  %v2010_v28 = vld [vmem:[%s2538_s7 + $0x20] ss:$12 sps:$4 sm:$0xff]   ;;  %v2017_v29 = vld [vmem:[%s2538_s7 + $0x38] ss:$12 sps:$4 sm:$0xff]  }
  0x78   : > { %1710 = vmatprep.subr.bf16.mxu0 %v1991_v9  ;;  %1832 = vmatprep.mubr.bf16.mxu1 %v2009_v24  ;;  %v2013_v30 = vld [vmem:[%s2538_s7 + $0x18] ss:$12 sps:$4 sm:$0xff]   ;;  %v2014_v31 = vld [vmem:[%s2538_s7 + $0x34] ss:$12 sps:$4 sm:$0xff]   ;;  %v2018_v32 = vld [vmem:[%s2538_s7 + $0x50] ss:$12 sps:$4 sm:$0xff]  }
  0x79   : > { %1821 = vmatpush3.bf16.msra.mxu1 %v1990_v8  ;;  %v2025_v33 = vld [vmem:[%s2538_s7 + $0x68] ss:$12 sps:$4 sm:$0xff]   ;;  %v2016_v34 = vld [vmem:[%s2538_s7 + $0x30] ss:$12 sps:$4 sm:$0xff]   ;;  %v2019_v35 = vld [vmem:[%s2538_s7 + $0x4c] ss:$12 sps:$4 sm:$0xff]  }
  0x7a   : > { %1822 = vmatprep.subr.bf16.mxu1 %v1993_v11  ;;  %v2026_v36 = vld [vmem:[%s2538_s7 + $0x80] ss:$12 sps:$4 sm:$0xff]   ;;  %v2033_v37 = vld [vmem:[%s2538_s7 + $0x98] ss:$12 sps:$4 sm:$0xff]   ;;  %v2021_v41 = vld [vmem:[%s2538_s7 + $0x48] ss:$12 sps:$4 sm:$0xff]  }
  0x7b   : > { %1711 = vmatpush3.bf16.msra.mxu0 %v1992_v10  ;;  %v2048_v40 = vld [vmem:[#allocation8 + $0x10] sm:$0xff]   ;;  %v2027_v46 = vld [vmem:[%s2538_s7 + $0x7c] ss:$12 sps:$4 sm:$0xff]   ;;  %v2035_v51 = vld [vmem:[%s2538_s7 + $0xac] ss:$12 sps:$4 sm:$0xff]  }
  0x7c   : > { %1712 = vmatprep.subr.bf16.mxu0 %v1994_v12  ;;  %v2022_v42 = vld [vmem:[%s2538_s7 + $0x64] ss:$12 sps:$4 sm:$0xff]   ;;  %v2041_v44 = vld [vmem:[%s2538_s7 + $0xc8] ss:$12 sps:$4 sm:$0xff]   ;;  %v2024_v45 = vld [vmem:[%s2538_s7 + $0x60] ss:$12 sps:$4 sm:$0xff]  }
  0x7d   : > { %1823 = vmatpush3.bf16.msra.mxu1 %v1993_v11  ;;  %v2034_v43 = vld [vmem:[%s2538_s7 + $0xb0] ss:$12 sps:$4 sm:$0xff]   ;;  %v2042_v47 = vld [vmem:[%s2538_s7 + $0xe0] ss:$12 sps:$4 sm:$0xff]   ;;  %v2029_v48 = vld [vmem:[%s2538_s7 + $0x78] ss:$12 sps:$4 sm:$0xff]  }
  0x7e   : > { %1824 = vmatprep.subr.bf16.mxu1 %v1996_v13  ;;  %v2030_v49 = vld [vmem:[%s2538_s7 + $0x94] ss:$12 sps:$4 sm:$0xff]   ;;  %v2032_v50 = vld [vmem:[%s2538_s7 + $0x90] ss:$12 sps:$4 sm:$0xff]   ;;  %v2045_v56 = vld [vmem:[%s2538_s7 + $0xd8] ss:$12 sps:$4 sm:$0xff]  }
  0x7f   : > { %1713 = vmatpush3.bf16.msra.mxu0 %v1995_v14  ;;  %v2037_v52 = vld [vmem:[%s2538_s7 + $0xa8] ss:$12 sps:$4 sm:$0xff]   ;;  %v2038_v53 = vld [vmem:[%s2538_s7 + $0xc4] ss:$12 sps:$4 sm:$0xff]   ;;  %v2040_v54 = vld [vmem:[%s2538_s7 + $0xc0] ss:$12 sps:$4 sm:$0xff]  }
  0x80   : > { %1714 = vmatprep.subr.bf16.mxu0 %v1997_v15  ;;  %v2043_v55 = vld [vmem:[%s2538_s7 + $0xdc] ss:$12 sps:$4 sm:$0xff]   ;;  %v2050_v58 = vld [vmem:[#allocation8 + $0x20] sm:$0xff]   ;;  %v2052_v60 = vld [vmem:[#allocation8 + $0x30] sm:$0xff]   ;;  %s2224_s7 = sshll.u32 %s2315_s15, 4  ;;  %s2225_s7 = int_to_ptr.vmem [resolvable:$false] %s2224_s7 }
  0x81   : > { %1825 = vmatpush3.bf16.msra.mxu1 %v1996_v13  ;;  %v2049_v57 = vld [vmem:[#allocation8 + $0x18] sm:$0xff]   ;;  %v2051_v59 = vld [vmem:[#allocation8 + $0x28] sm:$0xff]   ;;  %v2581_v5 = vld [vmem:[%s2924_s2] ss:$0 sm:$0xff]  ;;  %s2226_s26 = scalar_lea.vmem %s2225_s7, 5120  ;;  %p2227_p3 = scmp.lt.s32.totalorder %s2870_s13, %s2225_s7 }
  0x82   : > { %1826 = vmatprep.subr.bf16.mxu1 %v1999_v16  ;;  %v2053_v61 = vld [vmem:[#allocation8 + $0x38] sm:$0xff]   ;;  %p2228_p5 = scmp.lt.s32.totalorder %s2226_s26, %s2220_s27 }
  0x83   : > { %1715 = vmatpush3.bf16.msra.mxu0 %v1998_v17 }
  0x84   : > { %1716 = vmatprep.subr.bf16.mxu0 %v2000_v18  ;;  %p2229_p9 = por %p2228_p5, %p2227_p3 }
  0x85   : > { %1827 = vmatpush3.bf16.msra.mxu1 %v1999_v16 }
  0x86   : > { %1828 = vmatprep.subr.bf16.mxu1 %v2002_v20  ;;  %p2230_p2 = pnand %p2229_p9, %p2223_p10 }
  0x87   : > { %1717 = vmatpush3.bf16.msra.mxu0 %v2001_v19 }
  0x88   : > { %1718 = vmatprep.subr.bf16.mxu0 %v2003_v21 }
  0x89   : > { %1829 = vmatpush3.bf16.msra.mxu1 %v2002_v20 }
  0x8a   : > { %1830 = vmatprep.subr.bf16.mxu1 %v2005_v22 }
  0x8b   : > { %1719 = vmatpush3.bf16.msra.mxu0 %v2004_v25 }
  0x8d   : > { %1831 = vmatpush3.bf16.msra.mxu1 %v2005_v22 }
  0x8e   : > { %767 = vmatmul.mubr.bf16.vlgmr.msra.gmra.mrb[0].mxu0 %v2006_v26  ;;  %1852 = vmatprep.subr.bf16.mxu1 %v2046_v38 }
  0x8f   : > { %774 = vmatprep.mubr.bf16.mxu0 %v2011_v27 }
  0x90   : > { %1833 = vmatmul.mubr.bf16.vlgmr.msra.gmra.mrb[0].mxu1 %v2010_v28 }
  0x91   : > { %1836 = vmatprep.mubr.bf16.mxu1 %v2017_v29  ;;  %1853 = vmatpush3.bf16.msra.mxu1 %v2046_v38 }
  0x92   : > { %1854 = vmatprep.subr.bf16.mxu1 %v2047_v39 }
  0x95   : > { %1855 = vmatpush3.bf16.msra.mxu1 %v2047_v39 }
  0x96   : > { %775 = vmatmul.mubr.bf16.gmra.mrb[4].mxu0 %v2013_v30  ;;  %1856 = vmatprep.subr.bf16.mxu1 %v2048_v40 }
  0x97   : > { %782 = vmatprep.mubr.bf16.mxu0 %v2014_v31 }
  0x98   : > { %1837 = vmatmul.mubr.bf16.gmra.mrb[4].mxu1 %v2018_v32 }
  0x99   : > { %1840 = vmatprep.mubr.bf16.mxu1 %v2025_v33  ;;  %1857 = vmatpush3.bf16.msra.mxu1 %v2048_v40 }
  0x9a   : > { %1858 = vmatprep.subr.bf16.mxu1 %v2049_v57 }
  0x9d   : > { %1859 = vmatpush3.bf16.msra.mxu1 %v2049_v57 }
  0x9e   : > { %783 = vmatmul.mubr.bf16.gmra.mrb[8].mxu0 %v2016_v34  ;;  %1860 = vmatprep.subr.bf16.mxu1 %v2050_v58 }
  0x9f   : > { %790 = vmatprep.mubr.bf16.mxu0 %v2019_v35 }
  0xa0   : > { %1841 = vmatmul.mubr.bf16.gmra.mrb[8].mxu1 %v2026_v36 }
  0xa1   : > { %1844 = vmatprep.mubr.bf16.mxu1 %v2033_v37  ;;  %1861 = vmatpush3.bf16.msra.mxu1 %v2050_v58 }
  0xa2   : > { %1862 = vmatprep.subr.bf16.mxu1 %v2051_v59 }
  0xa5   : > { %1863 = vmatpush3.bf16.msra.mxu1 %v2051_v59 }
  0xa6   : > { %791 = vmatmul.mubr.bf16.gmra.mrb[12].mxu0 %v2021_v41  ;;  %1864 = vmatprep.subr.bf16.mxu1 %v2052_v60 }
  0xa7   : > { %798 = vmatprep.mubr.bf16.mxu0 %v2022_v42 }
  0xa8   : > { %1845 = vmatmul.mubr.bf16.gmra.mrb[12].mxu1 %v2034_v43 }
  0xa9   : > { %1848 = vmatprep.mubr.bf16.mxu1 %v2041_v44  ;;  %1865 = vmatpush3.bf16.msra.mxu1 %v2052_v60 }
  0xaa   : > { %1866 = vmatprep.subr.bf16.mxu1 %v2053_v61 }
  0xad   : > { %1867 = vmatpush3.bf16.msra.mxu1 %v2053_v61 }
  0xae   : > { %799 = vmatmul.mubr.bf16.gmra.mrb[16].mxu0 %v2024_v45 }
  0xaf   : > { %806 = vmatprep.mubr.bf16.mxu0 %v2027_v46 }
  0xb0   : > { %1849 = vmatmul.mubr.bf16.gmra.mrb[16].mxu1 %v2042_v47 }
  0xb6   : > { %807 = vmatmul.mubr.bf16.gmra.mrb[20].mxu0 %v2029_v48 }
  0xb7   : > { %814 = vmatprep.mubr.bf16.mxu0 %v2030_v49 }
  0xbe   : > { %815 = vmatmul.mubr.bf16.gmra.mrb[24].mxu0 %v2032_v50 }
  0xbf   : > { %822 = vmatprep.mubr.bf16.mxu0 %v2035_v51 }
  0xc6   : > { %823 = vmatmul.mubr.bf16.gmra.mrb[28].mxu0 %v2037_v52 }
  0xc7   : > { %830 = vmatprep.mubr.bf16.mxu0 %v2038_v53 }
  0xce   : > { %831 = vmatmul.mubr.bf16.gmra.mrb[32].mxu0 %v2040_v54 }
  0xcf   : > { %838 = vmatprep.mubr.bf16.mxu0 %v2043_v55 }
  0xd6   : > { %839 = vmatmul.mubr.bf16.gmra.mrb[36].mxu0 %v2045_v56 }
 0x161   : > { %v1720_v62 = vpop.f32.mrb[0].mxu0 }
 0x162   : > { %v1721_v63 = vpop.f32.mrb[1].mxu0 }
 0x163   : > { %v1722_v0 = vadd.f32 %v1721_v63, %v1720_v62  ;;  %v1723_v1 = vpop.f32.mrb[2].mxu0  ;;  %v1834_v2 = vpop.f32.mrb[0].mxu1 }
 0x164   : > { %v1724_v3 = vpop.f32.mrb[3].mxu0  ;;  %v881_v4 = vpop.f32.mrb[1].mxu1 }
 0x165   : > { %v1725_v6 = vadd.f32 %v1724_v3, %v1723_v1  ;;  %v882_v7 = vadd.f32 %v1722_v0, %v881_v4  ;;  %v1835_v8 = vpop.f32.mrb[2].mxu1 }
 0x166   : > { %v884_v9 = vpop.f32.mrb[3].mxu1 }
 0x167   : > { %v1030_v10 = vadd.f32 %v2581_v5, %v882_v7  ;;  %v885_v11 = vadd.f32 %v1725_v6, %v884_v9 }
 0x169   : > { %v1031_v12 = vadd.f32 %v2581_v5, %v885_v11  ;;  %v1726_v13 = vpop.f32.mrb[4].mxu0  ;;  %v1050_v15 = vmax.f32 %v1030_v10, 0.0 }
 0x16a   : > { %v1727_v14 = vpop.f32.mrb[5].mxu0 }
 0x16b   : > { %v1051_v16 = vmax.f32 %v1031_v12, 0.0  ;;  %v1728_v17 = vadd.f32 %v1727_v14, %v1726_v13  ;;  %v1729_v18 = vpop.f32.mrb[6].mxu0  ;;  %v1838_v19 = vpop.f32.mrb[4].mxu1 }
 0x16c   : > { %v1730_v20 = vpop.f32.mrb[7].mxu0  ;;  %v897_v21 = vpop.f32.mrb[5].mxu1 }
 0x16d   : > { %v890_v22 = vadd.f32 %v1834_v2, %v1728_v17  ;;  %v1731_v23 = vadd.f32 %v1730_v20, %v1729_v18  ;;  %v1070_v24 = vpack.c.bf16 %v1051_v16, %v1050_v15  ;;  %v1839_v25 = vpop.f32.mrb[6].mxu1 }
 0x16e   : > { %v900_v26 = vpop.f32.mrb[7].mxu1 }
 0x16f   : > { %v1032_v27 = vadd.f32 %v2581_v5, %v890_v22  ;;  %v893_v28 = vadd.f32 %v1835_v8, %v1731_v23  ;;  %1868 = vmatprep.mubr.bf16.mxu1 %v1070_v24 }
 0x171   : > { %v1033_v29 = vadd.f32 %v2581_v5, %v893_v28  ;;  %v1732_v30 = vpop.f32.mrb[8].mxu0  ;;  %v1052_v32 = vmax.f32 %v1032_v27, 0.0 }
 0x172   : > { %v1733_v31 = vpop.f32.mrb[9].mxu0 }
 0x173   : > { %v1053_v33 = vmax.f32 %v1033_v29, 0.0  ;;  %v1734_v34 = vadd.f32 %v1733_v31, %v1732_v30  ;;  %v1735_v35 = vpop.f32.mrb[10].mxu0  ;;  %v1842_v36 = vpop.f32.mrb[8].mxu1 }
 0x174   : > { %v1736_v37 = vpop.f32.mrb[11].mxu0  ;;  %v913_v38 = vpop.f32.mrb[9].mxu1 }
 0x175   : > { %v1071_v39 = vpack.c.bf16 %v1053_v33, %v1052_v32  ;;  %v1737_v40 = vadd.f32 %v1736_v37, %v1735_v35  ;;  %v898_v41 = vadd.f32 %v1734_v34, %v897_v21  ;;  %v1843_v42 = vpop.f32.mrb[10].mxu1 }
 0x176   : > { %v916_v43 = vpop.f32.mrb[11].mxu1 }
 0x177   : > { %v1034_v44 = vadd.f32 %v2581_v5, %v898_v41  ;;  %v901_v45 = vadd.f32 %v1737_v40, %v900_v26  ;;  %1869 = vmatmul.mubr.bf16.vlgmr.msra.gmra.mrb[20].mxu1 %v1071_v39 }
 0x179   : > { %v1035_v46 = vadd.f32 %v2581_v5, %v901_v45  ;;  %v1738_v47 = vpop.f32.mrb[12].mxu0  ;;  %v1054_v49 = vmax.f32 %v1034_v44, 0.0 }
 0x17a   : > { %v1739_v48 = vpop.f32.mrb[13].mxu0 }
 0x17b   : > { %v1055_v50 = vmax.f32 %v1035_v46, 0.0  ;;  %v1740_v51 = vadd.f32 %v1739_v48, %v1738_v47  ;;  %v1741_v52 = vpop.f32.mrb[14].mxu0  ;;  %v2589_v53 = vpop.f32.mrb[12].mxu1 }
 0x17c   : > { %v1742_v54 = vpop.f32.mrb[15].mxu0  ;;  %v929_v55 = vpop.f32.mrb[13].mxu1 }
 0x17d   : > { %v906_v56 = vadd.f32 %v1838_v19, %v1740_v51  ;;  %v1743_v57 = vadd.f32 %v1742_v54, %v1741_v52  ;;  %v1072_v58 = vpack.c.bf16 %v1055_v50, %v1054_v49  ;;  %v2591_v59 = vpop.f32.mrb[14].mxu1 }
 0x17e   : > { %v932_v60 = vpop.f32.mrb[15].mxu1 }
 0x17f   : > { %v1036_v61 = vadd.f32 %v2581_v5, %v906_v56  ;;  %v909_v62 = vadd.f32 %v1839_v25, %v1743_v57  ;;  %1872 = vmatprep.mubr.bf16.mxu1 %v1072_v58 }
 0x181   : > { %v1037_v63 = vadd.f32 %v2581_v5, %v909_v62  ;;  %v1744_v0 = vpop.f32.mrb[16].mxu0  ;;  %v1056_v2 = vmax.f32 %v1036_v61, 0.0 }
 0x182   : > { %v1745_v1 = vpop.f32.mrb[17].mxu0 }
 0x183   : > { %v1057_v3 = vmax.f32 %v1037_v63, 0.0  ;;  %v1746_v4 = vadd.f32 %v1745_v1, %v1744_v0  ;;  %v1747_v6 = vpop.f32.mrb[18].mxu0  ;;  %v2595_v7 = vpop.f32.mrb[16].mxu1 }
 0x184   : > { %v1748_v8 = vpop.f32.mrb[19].mxu0  ;;  %v945_v9 = vpop.f32.mrb[17].mxu1 }
 0x185   : > { %v1749_v10 = vadd.f32 %v1748_v8, %v1747_v6  ;;  %v914_v11 = vadd.f32 %v1746_v4, %v913_v38  ;;  %v1073_v12 = vpack.c.bf16 %v1057_v3, %v1056_v2  ;;  %v2597_v13 = vpop.f32.mrb[18].mxu1 }
 0x186   : > { %v948_v14 = vpop.f32.mrb[19].mxu1 }
 0x187   : > { %v1038_v15 = vadd.f32 %v2581_v5, %v914_v11  ;;  %v917_v16 = vadd.f32 %v1749_v10, %v916_v43  ;;  %1873 = vmatmul.mubr.bf16.gmra.mrb[24].mxu1 %v1073_v12 }
 0x189   : > { %v1039_v17 = vadd.f32 %v2581_v5, %v917_v16  ;;  %v1750_v18 = vpop.f32.mrb[20].mxu0  ;;  %v1058_v20 = vmax.f32 %v1038_v15, 0.0 }
 0x18a   : > { %v1751_v19 = vpop.f32.mrb[21].mxu0 }
 0x18b   : > { %v1059_v21 = vmax.f32 %v1039_v17, 0.0  ;;  %v1752_v22 = vadd.f32 %v1751_v19, %v1750_v18  ;;  %v1753_v23 = vpop.f32.mrb[22].mxu0 }
 0x18c   : > { %v1754_v24 = vpop.f32.mrb[23].mxu0 }
 0x18d   : > { %v922_v25 = vadd.f32 %v1842_v36, %v1752_v22  ;;  %v1755_v26 = vadd.f32 %v1754_v24, %v1753_v23  ;;  %v1074_v27 = vpack.c.bf16 %v1059_v21, %v1058_v20 }
 0x18f   : > { %v1040_v28 = vadd.f32 %v2581_v5, %v922_v25  ;;  %v925_v29 = vadd.f32 %v1843_v42, %v1755_v26  ;;  %1876 = vmatprep.mubr.bf16.mxu1 %v1074_v27  ;;  %v1264_v25 = vlaneseq }
 0x191   : > { %v1041_v30 = vadd.f32 %v2581_v5, %v925_v29  ;;  %v1756_v31 = vpop.f32.mrb[24].mxu0  ;;  %v1060_v33 = vmax.f32 %v1040_v28, 0.0  ;;  %v2615_v26 = vand.u32 127, %v1264_v25 }
 0x192   : > { %v1757_v32 = vpop.f32.mrb[25].mxu0 }
 0x193   : > { %v1061_v34 = vmax.f32 %v1041_v30, 0.0  ;;  %v1758_v35 = vadd.f32 %v1757_v32, %v1756_v31  ;;  %v1759_v37 = vpop.f32.mrb[26].mxu0  ;;  %vm1266_vm0 = vcmp.lt.s32.totalorder %v2615_v26, 8 }
 0x194   : > { %v1760_v38 = vpop.f32.mrb[27].mxu0 }
 0x195   : > { %v1761_v39 = vadd.f32 %v1760_v38, %v1759_v37  ;;  %v930_v40 = vadd.f32 %v1758_v35, %v929_v55  ;;  %v1075_v41 = vpack.c.bf16 %v1061_v34, %v1060_v33 }
 0x197   : > { %v1042_v36 = vadd.f32 %v2581_v5, %v930_v40  ;;  %v933_v43 = vadd.f32 %v1761_v39, %v932_v60  ;;  %1877 = vmatmul.mubr.bf16.gmra.mrb[28].mxu1 %v1075_v41 }
 0x199   : > { %v1043_v44 = vadd.f32 %v2581_v5, %v933_v43  ;;  %v1762_v42 = vpop.f32.mrb[28].mxu0  ;;  %v1062_v46 = vmax.f32 %v1042_v36, 0.0 }
 0x19a   : > { %v1763_v45 = vpop.f32.mrb[29].mxu0 }
 0x19b   : > { %v1063_v47 = vmax.f32 %v1043_v44, 0.0  ;;  %v1764_v48 = vadd.f32 %v1763_v45, %v1762_v42  ;;  %v1765_v49 = vpop.f32.mrb[30].mxu0 }
 0x19c   : > { %v1766_v50 = vpop.f32.mrb[31].mxu0 }
 0x19d   : > { %v938_v51 = vadd.f32 %v2589_v53, %v1764_v48  ;;  %v1767_v52 = vadd.f32 %v1766_v50, %v1765_v49  ;;  %v1076_v54 = vpack.c.bf16 %v1063_v47, %v1062_v46 }
 0x19f   : > { %v1044_v55 = vadd.f32 %v2581_v5, %v938_v51  ;;  %v941_v56 = vadd.f32 %v2591_v59, %v1767_v52  ;;  %1880 = vmatprep.mubr.bf16.mxu1 %v1076_v54 }
 0x1a1   : > { %v1045_v57 = vadd.f32 %v2581_v5, %v941_v56  ;;  %v1768_v58 = vpop.f32.mrb[32].mxu0  ;;  %v1064_v61 = vmax.f32 %v1044_v55, 0.0 }
 0x1a2   : > { %v1769_v60 = vpop.f32.mrb[33].mxu0 }
 0x1a3   : > { %v1065_v62 = vmax.f32 %v1045_v57, 0.0  ;;  %v1770_v63 = vadd.f32 %v1769_v60, %v1768_v58  ;;  %v1771_v0 = vpop.f32.mrb[34].mxu0 }
 0x1a4   : > { %v1772_v1 = vpop.f32.mrb[35].mxu0 }
 0x1a5   : > { %v1773_v2 = vadd.f32 %v1772_v1, %v1771_v0  ;;  %v946_v3 = vadd.f32 %v1770_v63, %v945_v9  ;;  %v1077_v4 = vpack.c.bf16 %v1065_v62, %v1064_v61 }
 0x1a7   : > { %v1046_v53 = vadd.f32 %v2581_v5, %v946_v3  ;;  %v949_v6 = vadd.f32 %v1773_v2, %v948_v14  ;;  %1881 = vmatmul.mubr.bf16.gmra.mrb[32].mxu1 %v1077_v4 }
 0x1a9   : > { %v1047_v8 = vadd.f32 %v2581_v5, %v949_v6  ;;  %v1774_v59 = vpop.f32.mrb[36].mxu0  ;;  %v1066_v11 = vmax.f32 %v1046_v53, 0.0 }
 0x1aa   : > { %v1775_v10 = vpop.f32.mrb[37].mxu0 }
 0x1ab   : > { %v1067_v12 = vmax.f32 %v1047_v8, 0.0  ;;  %v1776_v15 = vadd.f32 %v1775_v10, %v1774_v59  ;;  %v1777_v16 = vpop.f32.mrb[38].mxu0 }
 0x1ac   : > { %v1778_v17 = vpop.f32.mrb[39].mxu0 }
 0x1ad   : > { %v954_v18 = vadd.f32 %v2595_v7, %v1776_v15  ;;  %v1779_v19 = vadd.f32 %v1778_v17, %v1777_v16  ;;  %v1078_v20 = vpack.c.bf16 %v1067_v12, %v1066_v11  ;;  %v2620_v7 = vld [vmem:[%s2926_s4] ss:$0 sm:$0xff] }
 0x1af   : > { %v1048_v9 = vadd.f32 %v2581_v5, %v954_v18  ;;  %v957_v21 = vadd.f32 %v2597_v13, %v1779_v19  ;;  %1884 = vmatprep.mubr.bf16.mxu1 %v1078_v20 }
 0x1b1   : > { %v1049_v14 = vadd.f32 %v2581_v5, %v957_v21  ;;  %v1068_v22 = vmax.f32 %v1048_v9, 0.0 }
 0x1b3   : > { %v1069_v23 = vmax.f32 %v1049_v14, 0.0 }
 0x1b5   : > { %v1079_v24 = vpack.c.bf16 %v1069_v23, %v1068_v22 }
 0x1b7   : > { %1885 = vmatmul.mubr.bf16.gmra.mrb[36].mxu1 %v1079_v24 }
 0x24a   : > { %v1870_v27 = vpop.f32.mrb[20].mxu1 }
 0x24b   : > { %v1194_v13 = vadd.f32 %v1870_v27, %v2620_v7  ;;  %v1185_v28 = vpop.f32.mrb[21].mxu1 }
 0x24c   : > { %v1186_v5 = vadd.f32 %v2620_v7, %v1185_v28  ;;  %v1871_v29 = vpop.f32.mrb[22].mxu1 }
 0x24d   : > { %v1197_v30 = vadd.f32 %v1871_v29, %v2620_v7  ;;  %v1188_v31 = vpop.f32.mrb[23].mxu1  ;;  %v2628_v32 = vsel %vm1266_vm0, %v1194_v13, -inf }
 0x24e   : > { %v1189_v33 = vadd.f32 %v2620_v7, %v1188_v31  ;;  %1291 = vmax.xlane.f32.xlu1 %v2628_v32  ;;  %v2634_v34 = vsel %vm1266_vm0, %v1186_v5, -inf }
 0x24f   : > { %1287 = vmax.xlane.f32.xlu0 %v2634_v34  ;;  %v2639_v35 = vsel %vm1266_vm0, %v1197_v30, -inf }
 0x250   : > { %v2644_v37 = vsel %vm1266_vm0, %v1189_v33, -inf }
 0x252   : > { %1293 = vmax.xlane.f32.xlu1 %v2639_v35 }
 0x253   : > { %1289 = vmax.xlane.f32.xlu0 %v2644_v37 }
 0x25a   : > { %v1874_v38 = vpop.f32.mrb[24].mxu1 }
 0x25b   : > { %v1210_v39 = vadd.f32 %v1874_v38, %v2620_v7  ;;  %v1201_v40 = vpop.f32.mrb[25].mxu1 }
 0x25c   : > { %v1875_v41 = vpop.f32.mrb[26].mxu1  ;;  %v1202_v36 = vadd.f32 %v2620_v7, %v1201_v40 }
 0x25d   : > { %v1213_v43 = vadd.f32 %v1875_v41, %v2620_v7  ;;  %v1204_v44 = vpop.f32.mrb[27].mxu1  ;;  %v2652_v42 = vsel %vm1266_vm0, %v1210_v39, -inf }
 0x25e   : > { %1299 = vmax.xlane.f32.xlu0 %v2652_v42  ;;  %v1205_v45 = vadd.f32 %v2620_v7, %v1204_v44  ;;  %v2663_v47 = vsel %vm1266_vm0, %v1202_v36, -inf }
 0x25f   : > { %v2658_v46 = vsel %vm1266_vm0, %v1213_v43, -inf }
 0x260   : > { %1301 = vmax.xlane.f32.xlu1 %v2658_v46  ;;  %v2668_v48 = vsel %vm1266_vm0, %v1205_v45, -inf }
 0x262   : > { %1295 = vmax.xlane.f32.xlu0 %v2663_v47 }
 0x264   : > { %1297 = vmax.xlane.f32.xlu1 %v2668_v48 }
 0x26a   : > { %v1878_v49 = vpop.f32.mrb[28].mxu1 }
 0x26b   : > { %v1226_v50 = vadd.f32 %v1878_v49, %v2620_v7  ;;  %v1217_v51 = vpop.f32.mrb[29].mxu1 }
 0x26c   : > { %v1879_v52 = vpop.f32.mrb[30].mxu1  ;;  %v1218_v54 = vadd.f32 %v2620_v7, %v1217_v51 }
 0x26d   : > { %v1229_v55 = vadd.f32 %v1879_v52, %v2620_v7  ;;  %v1220_v56 = vpop.f32.mrb[31].mxu1  ;;  %v2676_v57 = vsel %vm1266_vm0, %v1226_v50, -inf }
 0x26e   : > { %1307 = vmax.xlane.f32.xlu0 %v2676_v57  ;;  %v1221_v58 = vadd.f32 %v2620_v7, %v1220_v56  ;;  %v2687_v61 = vsel %vm1266_vm0, %v1218_v54, -inf }
 0x26f   : > { %v2682_v60 = vsel %vm1266_vm0, %v1229_v55, -inf }
 0x270   : > { %1309 = vmax.xlane.f32.xlu1 %v2682_v60  ;;  %v2692_v62 = vsel %vm1266_vm0, %v1221_v58, -inf }
 0x272   : > { %1303 = vmax.xlane.f32.xlu0 %v2687_v61 }
 0x274   : > { %1305 = vmax.xlane.f32.xlu1 %v2692_v62 }
 0x27a   : > { %v1882_v63 = vpop.f32.mrb[32].mxu1 }
 0x27b   : > { %v1242_v0 = vadd.f32 %v1882_v63, %v2620_v7  ;;  %v1233_v1 = vpop.f32.mrb[33].mxu1 }
 0x27c   : > { %v1883_v2 = vpop.f32.mrb[34].mxu1  ;;  %v1234_v3 = vadd.f32 %v2620_v7, %v1233_v1 }
 0x27d   : > { %v1245_v4 = vadd.f32 %v1883_v2, %v2620_v7  ;;  %v1236_v53 = vpop.f32.mrb[35].mxu1  ;;  %v2700_v6 = vsel %vm1266_vm0, %v1242_v0, -inf }
 0x27e   : > { %1315 = vmax.xlane.f32.xlu0 %v2700_v6  ;;  %v1237_v8 = vadd.f32 %v2620_v7, %v1236_v53  ;;  %v2711_v10 = vsel %vm1266_vm0, %v1234_v3, -inf }
 0x27f   : > { %v2706_v59 = vsel %vm1266_vm0, %v1245_v4, -inf }
 0x280   : > { %1317 = vmax.xlane.f32.xlu1 %v2706_v59  ;;  %v2716_v11 = vsel %vm1266_vm0, %v1237_v8, -inf }
 0x282   : > { %1311 = vmax.xlane.f32.xlu0 %v2711_v10 }
 0x284   : > { %1313 = vmax.xlane.f32.xlu1 %v2716_v11 }
 0x28a   : > { %v1886_v12 = vpop.f32.mrb[36].mxu1 }
 0x28b   : > { %v1249_v15 = vpop.f32.mrb[37].mxu1  ;;  %v1258_v19 = vadd.f32 %v1886_v12, %v2620_v7 }
 0x28c   : > { %v1250_v16 = vadd.f32 %v2620_v7, %v1249_v15  ;;  %v1887_v17 = vpop.f32.mrb[38].mxu1 }
 0x28d   : > { %v1252_v18 = vpop.f32.mrb[39].mxu1  ;;  %v1261_v21 = vadd.f32 %v1887_v17, %v2620_v7  ;;  %v2735_v22 = vsel %vm1266_vm0, %v1258_v19, -inf }
 0x28e   : > { %v1253_v20 = vadd.f32 %v2620_v7, %v1252_v18  ;;  %v2724_v9 = vsel %vm1266_vm0, %v1250_v16, -inf }
 0x28f   : > { %1319 = vmax.xlane.f32.xlu0 %v2724_v9  ;;  %v2740_v23 = vsel %vm1266_vm0, %v1261_v21, -inf }
 0x290   : > { %v2730_v14 = vsel %vm1266_vm0, %v1253_v20, -inf }
 0x291   : > { %1321 = vmax.xlane.f32.xlu1 %v2730_v14 }
 0x293   : > { %1323 = vmax.xlane.f32.xlu0 %v2735_v22 }
 0x295   : > { %1325 = vmax.xlane.f32.xlu1 %v2740_v23 }
 0x2db   : > { %v1292_v24 = vpop.xlane.xlu1 %1291 }
 0x2dc   : > { %v2744_v25 = vsub.f32 %v2628_v32, %v1292_v24  ;;  %v1288_v7 = vpop.xlane.xlu0 %1287 }
 0x2dd   : > { %v2747_v27 = vsub.f32 %v2634_v34, %v1288_v7 }
 0x2de   : > { %v1351_v13 = vmul.f32 1.442695, %v2744_v25 }
 0x2df   : > { %v1347_v28 = vmul.f32 1.442695, %v2747_v27  ;;  %v1294_v5 = vpop.xlane.xlu1 %1293 }
 0x2e0   : > { %2054 = vpow2.f32 %v1351_v13  ;;  %v2752_v26 = vsub.f32 %v2639_v35, %v1294_v5  ;;  %v1290_v29 = vpop.xlane.xlu0 %1289 }
 0x2e1   : > { %v2755_v30 = vsub.f32 %v2644_v37, %v1290_v29  ;;  %2056 = vpow2.f32 %v1347_v28 }
 0x2e2   : > { %v1353_v31 = vmul.f32 1.442695, %v2752_v26 }
 0x2e3   : > { %v1349_v32 = vmul.f32 1.442695, %v2755_v30 }
 0x2e4   : > { %2058 = vpow2.f32 %v1353_v31 }
 0x2e5   : > { %2060 = vpow2.f32 %v1349_v32 }
 0x2ea   : > { %v2055_v33 = vpop.eup %2054 }
 0x2eb   : > { %1391 = vadd.xlane.f32.xlu0 %v2055_v33  ;;  %v1300_v34 = vpop.xlane.xlu0 %1299  ;;  %v2057_v39 = vpop.eup %2056 }
 0x2ec   : > { %v2760_v38 = vsub.f32 %v2652_v42, %v1300_v34 }
 0x2ed   : > { %v1302_v35 = vpop.xlane.xlu1 %1301 }
 0x2ee   : > { %v2059_v40 = vpop.eup %2058  ;;  %v1359_v41 = vmul.f32 1.442695, %v2760_v38  ;;  %v2764_v37 = vsub.f32 %v2658_v46, %v1302_v35 }
 0x2ef   : > { %1393 = vadd.xlane.f32.xlu1 %v2059_v40  ;;  %1387 = vadd.xlane.f32.xlu0 %v2057_v39  ;;  %v1296_v36 = vpop.xlane.xlu0 %1295  ;;  %v2061_v42 = vpop.eup %2060 }
 0x2f0   : > { %2062 = vpow2.f32 %v1359_v41  ;;  %v1361_v43 = vmul.f32 1.442695, %v2764_v37  ;;  %v2768_v44 = vsub.f32 %v2663_v47, %v1296_v36 }
 0x2f1   : > { %v1298_v45 = vpop.xlane.xlu1 %1297 }
 0x2f2   : > { %2064 = vpow2.f32 %v1361_v43  ;;  %v1355_v49 = vmul.f32 1.442695, %v2768_v44  ;;  %v2772_v50 = vsub.f32 %v2668_v48, %v1298_v45 }
 0x2f3   : > { %1389 = vadd.xlane.f32.xlu1 %v2061_v42 }
 0x2f4   : > { %2066 = vpow2.f32 %v1355_v49  ;;  %v1357_v46 = vmul.f32 1.442695, %v2772_v50 }
 0x2f6   : > { %2068 = vpow2.f32 %v1357_v46 }
 0x2fa   : > { %v2063_v51 = vpop.eup %2062 }
 0x2fb   : > { %1399 = vadd.xlane.f32.xlu0 %v2063_v51  ;;  %v1308_v52 = vpop.xlane.xlu0 %1307 }
 0x2fc   : > { %v2065_v54 = vpop.eup %2064  ;;  %v2776_v47 = vsub.f32 %v2676_v57, %v1308_v52 }
 0x2fd   : > { %v1310_v55 = vpop.xlane.xlu1 %1309  ;;  %1401 = vadd.xlane.f32.xlu1 %v2065_v54 }
 0x2fe   : > { %v2067_v56 = vpop.eup %2066  ;;  %v1367_v58 = vmul.f32 1.442695, %v2776_v47  ;;  %v2780_v48 = vsub.f32 %v2682_v60, %v1310_v55 }
 0x2ff   : > { %1395 = vadd.xlane.f32.xlu0 %v2067_v56  ;;  %v1304_v63 = vpop.xlane.xlu0 %1303 }
 0x300   : > { %v2069_v0 = vpop.eup %2068  ;;  %2070 = vpow2.f32 %v1367_v58  ;;  %v1369_v1 = vmul.f32 1.442695, %v2780_v48  ;;  %v2784_v2 = vsub.f32 %v2687_v61, %v1304_v63 }
 0x301   : > { %v1306_v3 = vpop.xlane.xlu1 %1305  ;;  %1397 = vadd.xlane.f32.xlu1 %v2069_v0 }
 0x302   : > { %2072 = vpow2.f32 %v1369_v1  ;;  %v1363_v57 = vmul.f32 1.442695, %v2784_v2  ;;  %v2788_v4 = vsub.f32 %v2692_v62, %v1306_v3 }
 0x304   : > { %2074 = vpow2.f32 %v1363_v57  ;;  %v1365_v60 = vmul.f32 1.442695, %v2788_v4 }
 0x306   : > { %2076 = vpow2.f32 %v1365_v60 }
 0x30a   : > { %v2071_v53 = vpop.eup %2070 }
 0x30b   : > { %1407 = vadd.xlane.f32.xlu0 %v2071_v53  ;;  %v1316_v8 = vpop.xlane.xlu0 %1315 }
 0x30c   : > { %v2073_v12 = vpop.eup %2072  ;;  %v2792_v15 = vsub.f32 %v2700_v6, %v1316_v8 }
 0x30d   : > { %v1318_v61 = vpop.xlane.xlu1 %1317  ;;  %1409 = vadd.xlane.f32.xlu1 %v2073_v12 }
 0x30e   : > { %v2075_v16 = vpop.eup %2074  ;;  %v1375_v17 = vmul.f32 1.442695, %v2792_v15  ;;  %v2796_v18 = vsub.f32 %v2706_v59, %v1318_v61 }
 0x30f   : > { %1403 = vadd.xlane.f32.xlu0 %v2075_v16  ;;  %v1312_v62 = vpop.xlane.xlu0 %1311 }
 0x310   : > { %v2077_v19 = vpop.eup %2076  ;;  %2078 = vpow2.f32 %v1375_v17  ;;  %v1377_v20 = vmul.f32 1.442695, %v2796_v18  ;;  %v2800_v21 = vsub.f32 %v2711_v10, %v1312_v62 }
 0x311   : > { %v1314_v24 = vpop.xlane.xlu1 %1313  ;;  %1405 = vadd.xlane.f32.xlu1 %v2077_v19 }
 0x312   : > { %2080 = vpow2.f32 %v1377_v20  ;;  %v1371_v6 = vmul.f32 1.442695, %v2800_v21  ;;  %v2804_v7 = vsub.f32 %v2716_v11, %v1314_v24 }
 0x314   : > { %2082 = vpow2.f32 %v1371_v6  ;;  %v1373_v59 = vmul.f32 1.442695, %v2804_v7 }
 0x316   : > { %2084 = vpow2.f32 %v1373_v59 }
 0x31a   : > { %v2079_v13 = vpop.eup %2078 }
 0x31b   : > { %1415 = vadd.xlane.f32.xlu0 %v2079_v13 }
 0x31c   : > { %v2081_v28 = vpop.eup %2080  ;;  %v1320_v5 = vpop.xlane.xlu0 %1319 }
 0x31d   : > { %v2808_v29 = vsub.f32 %v2724_v9, %v1320_v5  ;;  %1417 = vadd.xlane.f32.xlu1 %v2081_v28 }
 0x31e   : > { %v2083_v10 = vpop.eup %2082  ;;  %v1322_v31 = vpop.xlane.xlu1 %1321 }
 0x31f   : > { %v1379_v32 = vmul.f32 1.442695, %v2808_v29  ;;  %v2812_v33 = vsub.f32 %v2730_v14, %v1322_v31  ;;  %1411 = vadd.xlane.f32.xlu0 %v2083_v10 }
 0x320   : > { %v2085_v11 = vpop.eup %2084  ;;  %v1324_v34 = vpop.xlane.xlu0 %1323 }
 0x321   : > { %2086 = vpow2.f32 %v1379_v32  ;;  %v1381_v39 = vmul.f32 1.442695, %v2812_v33  ;;  %v2816_v35 = vsub.f32 %v2735_v22, %v1324_v34  ;;  %1413 = vadd.xlane.f32.xlu1 %v2085_v11 }
 0x322   : > { %v1326_v9 = vpop.xlane.xlu1 %1325 }
 0x323   : > { %2088 = vpow2.f32 %v1381_v39  ;;  %v1383_v40 = vmul.f32 1.442695, %v2816_v35  ;;  %v2820_v41 = vsub.f32 %v2740_v23, %v1326_v9 }
 0x325   : > { %2090 = vpow2.f32 %v1383_v40  ;;  %v1385_v14 = vmul.f32 1.442695, %v2820_v41 }
 0x327   : > { %2092 = vpow2.f32 %v1385_v14 }
 0x32b   : > { %v2087_v36 = vpop.eup %2086 }
 0x32c   : > { %1419 = vadd.xlane.f32.xlu0 %v2087_v36 }
 0x32d   : > { %v2089_v43 = vpop.eup %2088 }
 0x32e   : > { %1421 = vadd.xlane.f32.xlu1 %v2089_v43 }
 0x32f   : > { %v2091_v45 = vpop.eup %2090 }
 0x330   : > { %1423 = vadd.xlane.f32.xlu0 %v2091_v45 }
 0x331   : > { %v2093_v22 = vpop.eup %2092 }
 0x332   : > { %1425 = vadd.xlane.f32.xlu1 %v2093_v22 }
 0x378   : > { %v1392_v42 = vpop.xlane.xlu0 %1391 }
 0x379   : > { %2094 = vlog2.f32 %v1392_v42 }
 0x37c   : > { %v1394_v49 = vpop.xlane.xlu1 %1393  ;;  %v1388_v46 = vpop.xlane.xlu0 %1387 }
 0x37d   : > { %2096 = vlog2.f32 %v1394_v49 }
 0x37e   : > { %2098 = vlog2.f32 %v1388_v46 }
 0x380   : > { %v1390_v23 = vpop.xlane.xlu1 %1389 }
 0x381   : > { %2100 = vlog2.f32 %v1390_v23 }
 0x383   : > { %v2095_v51 = vpop.eup %2094 }
 0x384   : > { %v1432_v52 = vmul.f32 0.6931472, %v2095_v51 }
 0x386   : > { %v1469_v54 = vsub.f32 %v2744_v25, %v1432_v52 }
 0x387   : > { %v2097_v55 = vpop.eup %2096 }
 0x388   : > { %v2099_v56 = vpop.eup %2098  ;;  %1489 = vst [vmem:[%s2825_s9 + $0x10] sm:$0xff] %v1469_v54  ;;  %v1434_v58 = vmul.f32 0.6931472, %v2097_v55  ;;  %v1400_v63 = vpop.xlane.xlu0 %1399 }
 0x389   : > { %v1428_v0 = vmul.f32 0.6931472, %v2099_v56  ;;  %2102 = vlog2.f32 %v1400_v63 }
 0x38a   : > { %v1470_v1 = vsub.f32 %v2752_v26, %v1434_v58  ;;  %v1402_v3 = vpop.xlane.xlu1 %1401 }
 0x38b   : > { %v2101_v57 = vpop.eup %2100  ;;  %v1467_v60 = vsub.f32 %v2747_v27, %v1428_v0  ;;  %2104 = vlog2.f32 %v1402_v3 }
 0x38c   : > { %1490 = vst [vmem:[%s2825_s9 + $0x18] sm:$0xff] %v1470_v1  ;;  %v1430_v25 = vmul.f32 0.6931472, %v2101_v57  ;;  %v1396_v53 = vpop.xlane.xlu0 %1395 }
 0x38d   : > { %1487 = vst [vmem:[%s2825_s9] sm:$0xff] %v1467_v60  ;;  %2106 = vlog2.f32 %v1396_v53 }
 0x38e   : > { %v1468_v8 = vsub.f32 %v2755_v30, %v1430_v25  ;;  %v1398_v12 = vpop.xlane.xlu1 %1397 }
 0x38f   : > { %2108 = vlog2.f32 %v1398_v12 }
 0x390   : > { %1488 = vst [vmem:[%s2825_s9 + $0x8] sm:$0xff] %v1468_v8 }
 0x393   : > { %v2103_v61 = vpop.eup %2102 }
 0x394   : > { %v1440_v16 = vmul.f32 0.6931472, %v2103_v61 }
 0x395   : > { %v2105_v26 = vpop.eup %2104 }
 0x396   : > { %v1473_v17 = vsub.f32 %v2760_v38, %v1440_v16  ;;  %v1442_v27 = vmul.f32 0.6931472, %v2105_v26 }
 0x397   : > { %v2107_v62 = vpop.eup %2106 }
 0x398   : > { %1493 = vst [vmem:[%s2825_s9 + $0x30] sm:$0xff] %v1473_v17  ;;  %v1474_v19 = vsub.f32 %v2764_v37, %v1442_v27  ;;  %v1436_v20 = vmul.f32 0.6931472, %v2107_v62  ;;  %v1408_v24 = vpop.xlane.xlu0 %1407 }
 0x399   : > { %v2109_v6 = vpop.eup %2108  ;;  %2110 = vlog2.f32 %v1408_v24 }
 0x39a   : > { %1494 = vst [vmem:[%s2825_s9 + $0x38] sm:$0xff] %v1474_v19  ;;  %v1471_v30 = vsub.f32 %v2768_v44, %v1436_v20  ;;  %v1438_v59 = vmul.f32 0.6931472, %v2109_v6  ;;  %v1410_v13 = vpop.xlane.xlu1 %1409 }
 0x39b   : > { %2112 = vlog2.f32 %v1410_v13 }
 0x39c   : > { %1491 = vst [vmem:[%s2825_s9 + $0x20] sm:$0xff] %v1471_v30  ;;  %v1472_v38 = vsub.f32 %v2772_v50, %v1438_v59  ;;  %v1404_v28 = vpop.xlane.xlu0 %1403 }
 0x39d   : > { %2114 = vlog2.f32 %v1404_v28 }
 0x39e   : > { %1492 = vst [vmem:[%s2825_s9 + $0x28] sm:$0xff] %v1472_v38  ;;  %v1406_v5 = vpop.xlane.xlu1 %1405 }
 0x39f   : > { %2116 = vlog2.f32 %v1406_v5 }
 0x3a3   : > { %v2111_v37 = vpop.eup %2110 }
 0x3a4   : > { %v1448_v10 = vmul.f32 0.6931472, %v2111_v37 }
 0x3a5   : > { %v2113_v31 = vpop.eup %2112 }
 0x3a6   : > { %v1477_v32 = vsub.f32 %v2776_v47, %v1448_v10  ;;  %v1450_v44 = vmul.f32 0.6931472, %v2113_v31 }
 0x3a7   : > { %v2115_v11 = vpop.eup %2114 }
 0x3a8   : > { %1497 = vst [vmem:[%s2825_s9 + $0x50] sm:$0xff] %v1477_v32  ;;  %v1478_v34 = vsub.f32 %v2780_v48, %v1450_v44  ;;  %v1444_v39 = vmul.f32 0.6931472, %v2115_v11  ;;  %v1416_v50 = vpop.xlane.xlu0 %1415 }
 0x3a9   : > { %v2117_v9 = vpop.eup %2116  ;;  %2118 = vlog2.f32 %v1416_v50 }
 0x3aa   : > { %1498 = vst [vmem:[%s2825_s9 + $0x58] sm:$0xff] %v1478_v34  ;;  %v1475_v40 = vsub.f32 %v2784_v2, %v1444_v39  ;;  %v1446_v14 = vmul.f32 0.6931472, %v2117_v9  ;;  %v1418_v36 = vpop.xlane.xlu1 %1417 }
 0x3ab   : > { %2120 = vlog2.f32 %v1418_v36 }
 0x3ac   : > { %1495 = vst [vmem:[%s2825_s9 + $0x40] sm:$0xff] %v1475_v40  ;;  %v1476_v47 = vsub.f32 %v2788_v4, %v1446_v14  ;;  %v1412_v43 = vpop.xlane.xlu0 %1411 }
 0x3ad   : > { %2122 = vlog2.f32 %v1412_v43 }
 0x3ae   : > { %1496 = vst [vmem:[%s2825_s9 + $0x48] sm:$0xff] %v1476_v47  ;;  %v1414_v45 = vpop.xlane.xlu1 %1413 }
 0x3af   : > { %2124 = vlog2.f32 %v1414_v45 }
 0x3b3   : > { %v2119_v48 = vpop.eup %2118 }
 0x3b4   : > { %v1456_v22 = vmul.f32 0.6931472, %v2119_v48 }
 0x3b5   : > { %v2121_v42 = vpop.eup %2120 }
 0x3b6   : > { %v1481_v49 = vsub.f32 %v2792_v15, %v1456_v22  ;;  %v1458_v2 = vmul.f32 0.6931472, %v2121_v42 }
 0x3b7   : > { %v2123_v46 = vpop.eup %2122 }
 0x3b8   : > { %1501 = vst [vmem:[%s2825_s9 + $0x70] sm:$0xff] %v1481_v49  ;;  %v1482_v23 = vsub.f32 %v2796_v18, %v1458_v2  ;;  %v1452_v51 = vmul.f32 0.6931472, %v2123_v46 }
 0x3b9   : > { %v2125_v4 = vpop.eup %2124  ;;  %v1420_v52 = vpop.xlane.xlu0 %1419 }
 0x3ba   : > { %1502 = vst [vmem:[%s2825_s9 + $0x78] sm:$0xff] %v1482_v23  ;;  %v1479_v54 = vsub.f32 %v2800_v21, %v1452_v51  ;;  %v1454_v55 = vmul.f32 0.6931472, %v2125_v4  ;;  %2126 = vlog2.f32 %v1420_v52 }
 0x3bb   : > { %v1422_v56 = vpop.xlane.xlu1 %1421 }
 0x3bc   : > { %1499 = vst [vmem:[%s2825_s9 + $0x60] sm:$0xff] %v1479_v54  ;;  %v1480_v15 = vsub.f32 %v2804_v7, %v1454_v55  ;;  %2128 = vlog2.f32 %v1422_v56 }
 0x3bd   : > { %v1424_v58 = vpop.xlane.xlu0 %1423 }
 0x3be   : > { %1500 = vst [vmem:[%s2825_s9 + $0x68] sm:$0xff] %v1480_v15  ;;  %2130 = vlog2.f32 %v1424_v58 }
 0x3bf   : > { %v1426_v18 = vpop.xlane.xlu1 %1425 }
 0x3c0   : > { %2132 = vlog2.f32 %v1426_v18 }
 0x3c4   : > { %v2127_v63 = vpop.eup %2126 }
 0x3c5   : > { %v1460_v0 = vmul.f32 0.6931472, %v2127_v63 }
 0x3c6   : > { %v2129_v21 = vpop.eup %2128 }
 0x3c7   : > { %v1483_v1 = vsub.f32 %v2808_v29, %v1460_v0  ;;  %v1462_v3 = vmul.f32 0.6931472, %v2129_v21 }
 0x3c8   : > { %v2131_v57 = vpop.eup %2130 }
 0x3c9   : > { %1503 = vst [vmem:[%s2825_s9 + $0x80] sm:$0xff] %v1483_v1  ;;  %v1484_v7 = vsub.f32 %v2812_v33, %v1462_v3  ;;  %v1464_v60 = vmul.f32 0.6931472, %v2131_v57 }
 0x3ca   : > { %v2133_v25 = vpop.eup %2132 }
 0x3cb   : > { %1504 = vst [vmem:[%s2825_s9 + $0x88] sm:$0xff] %v1484_v7  ;;  %v1485_v53 = vsub.f32 %v2816_v35, %v1464_v60  ;;  %v1466_v8 = vmul.f32 0.6931472, %v2133_v25 }
 0x3cd   : > { %1505 = vst [vmem:[%s2825_s9 + $0x90] sm:$0xff] %v1485_v53  ;;  %v1486_v29 = vsub.f32 %v2820_v41, %v1466_v8 }
 0x3cf   : > { %1506 = vst [vmem:[%s2825_s9 + $0x98] sm:$0xff] %v1486_v29 }
 0x3d0   : > { %2233 = shalt.err (!%p2230_p2)
}
 0x3d1   : > { %s2234_s28 = scalar_lea.hbm %s2868_s17, 2560  ;;  %s2238_s24 = scalar_lea.hbm %s2927_s5, 5120 }
 0x3d2   : > { %p2235_p0 = scmp.ne.s32.totalorder %s2868_s17, %s2234_s28  ;;  %p2239_p6 = scmp.lt.u32.totalorder %s2868_s17, %s2927_s5 }
 0x3d3   : > { %p2240_p7 = scmp.lt.u32.totalorder %s2238_s24, %s2234_s28  ;;  %p2242_p8 = scmp.lt.u32.totalorder %s2234_s28, %s2868_s17 }
 0x3d4   : > { %p2236_p4 = pnand %p2235_p0, %p2942_p12 }
 0x3d5   : > { %p2241_p11 = por %p2240_p7, %p2239_p6 }
 0x3d6   : > { %p2237_p13 = pneg %p2236_p4 }
 0x3d7   : > { %p2243_p1 = por %p2242_p8, %p2241_p11 }
 0x3d9   : > { %p2244_p10 = pnand %p2243_p1, %p2237_p13 }
 0x3db   : > { %2247 = shalt.err (!%p2244_p10)
}
 0x3dc   : > { %s2316_s10 = smov 128   ;;  %s2317_s14 = smov 8  }
 0x3dd   : > { %1902 = dma.vmem_to_hbm [thread:$0]  (%p2942_p12), %s2870_s13, 2560, %s2868_s17, %s1508_s21, %s2316_s10, %s2316_s10, %s2317_s14  }
 0x3de PF: > { %s1536_s27 = sand.u32 1, %s2286_s18   ;;  %p2943_p3 = scmp.ne.s32.totalorder %s2935_s29, 0 }
 0x3df   : > { %p2944_p5 = scmp.ge.s32.totalorder %s2306_s23, 2  ;;  %s1537_s15 = scalar_lea.sflag [#allocation5], %s1536_s27 }
 0x3e1   : > { %p1916_p9 = pnand %p2944_p5, %p2943_p3 }
 0x3e3   : > { %2281 = dma.done.wait (!%p1916_p9), %s1537_s15, 2560  }
 0x3e4   : > { %2283 = vsyncadd (!%p1916_p9), %s1537_s15, 4294964736  ;;  %s22_s23 = sadd.s32 1, %s2306_s23   ;;  %s2945_s18 = smov %s2290_s19 }
 0x3e5   : > { %p19_p2 = scmp.ge.s32.totalorder %s22_s23, 4   ;;  %s2946_s19 = smov %s2294_s20 }
 0x3e6   : > { %s2947_s20 = smov %s2493_s6  ;;  %s2948_s21 = smov %s2302_s22 }
 0x3e7   : > { %s2949_s22 = smov %s2951_s12  ;;  %21 = sbr.rel (!%p19_p2) target bundleno = 7 (0x7), region = 102 }
 0x3ee   :  { %1542 = vsyncpa [#allocation4], 1 }
 0x3ef   :  { %1544 = vsyncpa [#allocation4 + $0x1], 1 }
 0x3f0   :  { %1545 = vsyncpa [#allocation7], 1 }
 0x3f1   :  { %1546 = vsyncpa [#allocation5], 1 }
 0x3f2   :  { %1548 = vsyncpa [#allocation5 + $0x1], 1 }

</bundles_post_ra>
